<compile_context>
chip_gen: v6e
topology: v6e:2x2x1
jax: 0.10.0
libtpu: 0.0.40
codegen_flags: <defaults>
</compile_context>

<pallas_src>
import jax
import jax.numpy as jnp
from jax.experimental import pallas as pl
from jax.experimental.pallas import tpu as pltpu


H, W = 7, 7
HW = H * W                      # 49 spatial positions
C_IN, C_OUT = 128, 32
KH, KW = 3, 3
K_IM2COL = KH * KW * C_IN       # 1152

# Channel layout of the concatenated output (torch.cat order).
PASS_CH = [640] + [32] * 13     # x369, x376 ... x460 (before the conv result)
CONV_OFF = sum(PASS_CH)         # 1056 : conv output (x467) goes here
TAIL_OFF = CONV_OFF + C_OUT     # 1088 : x474 goes here
C_TOTAL = TAIL_OFF + 32         # 1120


def fused_conv_concat_kernel(xcol_ref, w_ref, *refs):
    """refs = 15 pass-through inputs (C_i, 49) followed by the (1120, 49) output."""
    o_ref = refs[-1]
    pass_refs = refs[:-1]

    # ---- conv2d(128->32, 3x3, pad 1) as ONE MXU matmul, K = 1152 ----
    # w_ref: (32, 1152), xcol_ref: (1152, 49)  ->  (32, 49) in f32.
    y = jnp.dot(w_ref[...], xcol_ref[...], preferred_element_type=jnp.float32)
    o_ref[CONV_OFF:CONV_OFF + C_OUT, :] = y

    # ---- fused channel concatenation: copy inputs into their channel slices ----
    # x369 (640, 49): copy in 128-row chunks to bound vreg live ranges.
    big = pass_refs[0]
    for r in range(0, PASS_CH[0], 128):
        o_ref[r:r + 128, :] = big[r:r + 128, :]

    off = PASS_CH[0]
    for ref in pass_refs[1:14]:          # 13 x (32, 49) maps before the conv slot
        o_ref[off:off + 32, :] = ref[...]
        off += 32
    # off == CONV_OFF here (conv result already written above).
    o_ref[TAIL_OFF:TAIL_OFF + 32, :] = pass_refs[14][...]    # x474


def _im2col_nchw(x_nchw):
    """(1, 128, 7, 7) -> (1152, 49) im2col with K ordered as (kh, kw, c_in)."""
    xp = jnp.pad(x_nchw[0], ((0, 0), (1, 1), (1, 1)))        # (128, 9, 9)
    slabs = [xp[:, kh:kh + H, kw:kw + W].reshape(C_IN, HW)
             for kh in range(KH) for kw in range(KW)]
    return jnp.concatenate(slabs, axis=0)                    # (1152, 49)


def forward(x466, x369, x376, x383, x390, x397, x404, x411, x418, x425,
            x432, x439, x446, x453, x460, x474, conv_w):
    # Conv operands (wrapper-side XLA glue: one pad + strided slices, no transposes
    # of activations; weight reshape matches the (kh, kw, c_in) im2col ordering).
    xcol = _im2col_nchw(x466)                                            # (1152, 49)
    w_mat = jnp.transpose(conv_w, (0, 2, 3, 1)).reshape(C_OUT, K_IM2COL)  # (32, 1152)

    passthrough = [x369, x376, x383, x390, x397, x404, x411, x418, x425,
                   x432, x439, x446, x453, x460, x474]
    pass_flat = [p.reshape(p.shape[1], HW) for p in passthrough]         # free reshapes

    n_inputs = 2 + len(pass_flat)
    out2d = pl.pallas_call(
        fused_conv_concat_kernel,
        out_shape=jax.ShapeDtypeStruct((C_TOTAL, HW), jnp.float32),
        in_specs=[pl.BlockSpec(memory_space=pltpu.VMEM)] * n_inputs,
        out_specs=pl.BlockSpec(memory_space=pltpu.VMEM),
    )(xcol, w_mat, *pass_flat)

    # (1120, 49) -> (1, 1120, 7, 7): contiguous reshape back to NCHW.
    return out2d.reshape(1, C_TOTAL, H, W)


if __name__ == "__main__":
    key = jax.random.PRNGKey(0)
    keys = jax.random.split(key, 18)

    # Inputs (shapes exactly as in the torch module).
    x369 = jax.random.normal(keys[0], (1, 640, H, W), jnp.float32)
    small = [jax.random.normal(keys[i + 1], (1, 32, H, W), jnp.float32)
             for i in range(13)]
    (x376, x383, x390, x397, x404, x411, x418,
     x425, x432, x439, x446, x453, x460) = small
    x466 = jax.random.normal(keys[14], (1, C_IN, H, W), jnp.float32)
    x474 = jax.random.normal(keys[15], (1, 32, H, W), jnp.float32)

    # Deterministic conv weights: Conv2d(128, 32, 3, 3), bias=False (OIHW).
    fan_in = C_IN * KH * KW
    bound = 1.0 / (fan_in ** 0.5)
    conv_w = jax.random.uniform(keys[16], (C_OUT, C_IN, KH, KW),
                                jnp.float32, -bound, bound)

    fwd = jax.jit(forward)
    out = jax.block_until_ready(
        fwd(x466, x369, x376, x383, x390, x397, x404, x411, x418,
            x425, x432, x439, x446, x453, x460, x474, conv_w))
    assert out.shape == (1, C_TOTAL, H, W), out.shape

    # Reference check: XLA conv + concat.
    ref_conv = jax.lax.conv_general_dilated(
        x466, conv_w, window_strides=(1, 1), padding=((1, 1), (1, 1)),
        dimension_numbers=("NCHW", "OIHW", "NCHW"),
        precision=jax.lax.Precision.HIGHEST)
    ref = jnp.concatenate(
        [x369, x376, x383, x390, x397, x404, x411, x418, x425, x432,
         x439, x446, x453, x460, ref_conv, x474], axis=1)
    assert jnp.allclose(out, ref, atol=1e-3, rtol=1e-3), \
        float(jnp.max(jnp.abs(out - ref)))

    print("KERNEL_OK")
</pallas_src>

<mosaic_0001>
module attributes {stable_mosaic.version = 11 : i64} {
  func.func @fused_conv_concat_kernel(%arg0: memref<1152x49xf32, #tpu.memory_space<vmem>>, %arg1: memref<32x1152xf32, #tpu.memory_space<vmem>>, %arg2: memref<640x49xf32, #tpu.memory_space<vmem>>, %arg3: memref<32x49xf32, #tpu.memory_space<vmem>>, %arg4: memref<32x49xf32, #tpu.memory_space<vmem>>, %arg5: memref<32x49xf32, #tpu.memory_space<vmem>>, %arg6: memref<32x49xf32, #tpu.memory_space<vmem>>, %arg7: memref<32x49xf32, #tpu.memory_space<vmem>>, %arg8: memref<32x49xf32, #tpu.memory_space<vmem>>, %arg9: memref<32x49xf32, #tpu.memory_space<vmem>>, %arg10: memref<32x49xf32, #tpu.memory_space<vmem>>, %arg11: memref<32x49xf32, #tpu.memory_space<vmem>>, %arg12: memref<32x49xf32, #tpu.memory_space<vmem>>, %arg13: memref<32x49xf32, #tpu.memory_space<vmem>>, %arg14: memref<32x49xf32, #tpu.memory_space<vmem>>, %arg15: memref<32x49xf32, #tpu.memory_space<vmem>>, %arg16: memref<32x49xf32, #tpu.memory_space<vmem>>, %arg17: memref<1120x49xf32, #tpu.memory_space<vmem>>) attributes {dimension_semantics = [], scalar_prefetch = 0 : i64, scratch_operands = 0 : i64, tpu.core_type = #tpu.core_type<tc>} {
    %c0 = arith.constant 0 : index
    %c0_0 = arith.constant 0 : index
    %0 = vector.load %arg1[%c0, %c0_0] : memref<32x1152xf32, #tpu.memory_space<vmem>>, vector<32x1152xf32>
    %c0_1 = arith.constant 0 : index
    %c0_2 = arith.constant 0 : index
    %1 = vector.load %arg0[%c0_1, %c0_2] : memref<1152x49xf32, #tpu.memory_space<vmem>>, vector<1152x49xf32>
    %cst = arith.constant dense<0.000000e+00> : vector<32x49xf32>
    %2 = tpu.matmul %0, %1, %cst {dimension_numbers = #tpu.dot_dimension_numbers<[1], [0], [0], [1], [0, 0, 1, 1], [], []>} : vector<32x1152xf32>, vector<1152x49xf32>, vector<32x49xf32> -> vector<32x49xf32>
    %c1056 = arith.constant 1056 : index
    %c0_3 = arith.constant 0 : index
    %3 = vector.load %arg17[%c1056, %c0_3] : memref<1120x49xf32, #tpu.memory_space<vmem>>, vector<32x49xf32>
    tpu.vector_store %arg17[%c1056, %c0_3], %2 {strides = array<i32>} : memref<1120x49xf32, #tpu.memory_space<vmem>>, vector<32x49xf32>,
    %c0_4 = arith.constant 0 : index
    %c0_5 = arith.constant 0 : index
    %4 = vector.load %arg2[%c0_4, %c0_5] : memref<640x49xf32, #tpu.memory_space<vmem>>, vector<128x49xf32>
    %c0_6 = arith.constant 0 : index
    %c0_7 = arith.constant 0 : index
    %5 = vector.load %arg17[%c0_6, %c0_7] : memref<1120x49xf32, #tpu.memory_space<vmem>>, vector<128x49xf32>
    tpu.vector_store %arg17[%c0_6, %c0_7], %4 {strides = array<i32>} : memref<1120x49xf32, #tpu.memory_space<vmem>>, vector<128x49xf32>,
    %c128 = arith.constant 128 : index
    %c0_8 = arith.constant 0 : index
    %6 = vector.load %arg2[%c128, %c0_8] : memref<640x49xf32, #tpu.memory_space<vmem>>, vector<128x49xf32>
    %c128_9 = arith.constant 128 : index
    %c0_10 = arith.constant 0 : index
    %7 = vector.load %arg17[%c128_9, %c0_10] : memref<1120x49xf32, #tpu.memory_space<vmem>>, vector<128x49xf32>
    tpu.vector_store %arg17[%c128_9, %c0_10], %6 {strides = array<i32>} : memref<1120x49xf32, #tpu.memory_space<vmem>>, vector<128x49xf32>,
    %c256 = arith.constant 256 : index
    %c0_11 = arith.constant 0 : index
    %8 = vector.load %arg2[%c256, %c0_11] : memref<640x49xf32, #tpu.memory_space<vmem>>, vector<128x49xf32>
    %c256_12 = arith.constant 256 : index
    %c0_13 = arith.constant 0 : index
    %9 = vector.load %arg17[%c256_12, %c0_13] : memref<1120x49xf32, #tpu.memory_space<vmem>>, vector<128x49xf32>
    tpu.vector_store %arg17[%c256_12, %c0_13], %8 {strides = array<i32>} : memref<1120x49xf32, #tpu.memory_space<vmem>>, vector<128x49xf32>,
    %c384 = arith.constant 384 : index
    %c0_14 = arith.constant 0 : index
    %10 = vector.load %arg2[%c384, %c0_14] : memref<640x49xf32, #tpu.memory_space<vmem>>, vector<128x49xf32>
    %c384_15 = arith.constant 384 : index
    %c0_16 = arith.constant 0 : index
    %11 = vector.load %arg17[%c384_15, %c0_16] : memref<1120x49xf32, #tpu.memory_space<vmem>>, vector<128x49xf32>
    tpu.vector_store %arg17[%c384_15, %c0_16], %10 {strides = array<i32>} : memref<1120x49xf32, #tpu.memory_space<vmem>>, vector<128x49xf32>,
    %c512 = arith.constant 512 : index
    %c0_17 = arith.constant 0 : index
    %12 = vector.load %arg2[%c512, %c0_17] : memref<640x49xf32, #tpu.memory_space<vmem>>, vector<128x49xf32>
    %c512_18 = arith.constant 512 : index
    %c0_19 = arith.constant 0 : index
    %13 = vector.load %arg17[%c512_18, %c0_19] : memref<1120x49xf32, #tpu.memory_space<vmem>>, vector<128x49xf32>
    tpu.vector_store %arg17[%c512_18, %c0_19], %12 {strides = array<i32>} : memref<1120x49xf32, #tpu.memory_space<vmem>>, vector<128x49xf32>,
    %c0_20 = arith.constant 0 : index
    %c0_21 = arith.constant 0 : index
    %14 = vector.load %arg3[%c0_20, %c0_21] : memref<32x49xf32, #tpu.memory_space<vmem>>, vector<32x49xf32>
    %c640 = arith.constant 640 : index
    %c0_22 = arith.constant 0 : index
    %15 = vector.load %arg17[%c640, %c0_22] : memref<1120x49xf32, #tpu.memory_space<vmem>>, vector<32x49xf32>
    tpu.vector_store %arg17[%c640, %c0_22], %14 {strides = array<i32>} : memref<1120x49xf32, #tpu.memory_space<vmem>>, vector<32x49xf32>,
    %c0_23 = arith.constant 0 : index
    %c0_24 = arith.constant 0 : index
    %16 = vector.load %arg4[%c0_23, %c0_24] : memref<32x49xf32, #tpu.memory_space<vmem>>, vector<32x49xf32>
    %c672 = arith.constant 672 : index
    %c0_25 = arith.constant 0 : index
    %17 = vector.load %arg17[%c672, %c0_25] : memref<1120x49xf32, #tpu.memory_space<vmem>>, vector<32x49xf32>
    tpu.vector_store %arg17[%c672, %c0_25], %16 {strides = array<i32>} : memref<1120x49xf32, #tpu.memory_space<vmem>>, vector<32x49xf32>,
    %c0_26 = arith.constant 0 : index
    %c0_27 = arith.constant 0 : index
    %18 = vector.load %arg5[%c0_26, %c0_27] : memref<32x49xf32, #tpu.memory_space<vmem>>, vector<32x49xf32>
    %c704 = arith.constant 704 : index
    %c0_28 = arith.constant 0 : index
    %19 = vector.load %arg17[%c704, %c0_28] : memref<1120x49xf32, #tpu.memory_space<vmem>>, vector<32x49xf32>
    tpu.vector_store %arg17[%c704, %c0_28], %18 {strides = array<i32>} : memref<1120x49xf32, #tpu.memory_space<vmem>>, vector<32x49xf32>,
    %c0_29 = arith.constant 0 : index
    %c0_30 = arith.constant 0 : index
    %20 = vector.load %arg6[%c0_29, %c0_30] : memref<32x49xf32, #tpu.memory_space<vmem>>, vector<32x49xf32>
    %c736 = arith.constant 736 : index
    %c0_31 = arith.constant 0 : index
    %21 = vector.load %arg17[%c736, %c0_31] : memref<1120x49xf32, #tpu.memory_space<vmem>>, vector<32x49xf32>
    tpu.vector_store %arg17[%c736, %c0_31], %20 {strides = array<i32>} : memref<1120x49xf32, #tpu.memory_space<vmem>>, vector<32x49xf32>,
    %c0_32 = arith.constant 0 : index
    %c0_33 = arith.constant 0 : index
    %22 = vector.load %arg7[%c0_32, %c0_33] : memref<32x49xf32, #tpu.memory_space<vmem>>, vector<32x49xf32>
    %c768 = arith.constant 768 : index
    %c0_34 = arith.constant 0 : index
    %23 = vector.load %arg17[%c768, %c0_34] : memref<1120x49xf32, #tpu.memory_space<vmem>>, vector<32x49xf32>
    tpu.vector_store %arg17[%c768, %c0_34], %22 {strides = array<i32>} : memref<1120x49xf32, #tpu.memory_space<vmem>>, vector<32x49xf32>,
    %c0_35 = arith.constant 0 : index
    %c0_36 = arith.constant 0 : index
    %24 = vector.load %arg8[%c0_35, %c0_36] : memref<32x49xf32, #tpu.memory_space<vmem>>, vector<32x49xf32>
    %c800 = arith.constant 800 : index
    %c0_37 = arith.constant 0 : index
    %25 = vector.load %arg17[%c800, %c0_37] : memref<1120x49xf32, #tpu.memory_space<vmem>>, vector<32x49xf32>
    tpu.vector_store %arg17[%c800, %c0_37], %24 {strides = array<i32>} : memref<1120x49xf32, #tpu.memory_space<vmem>>, vector<32x49xf32>,
    %c0_38 = arith.constant 0 : index
    %c0_39 = arith.constant 0 : index
    %26 = vector.load %arg9[%c0_38, %c0_39] : memref<32x49xf32, #tpu.memory_space<vmem>>, vector<32x49xf32>
    %c832 = arith.constant 832 : index
    %c0_40 = arith.constant 0 : index
    %27 = vector.load %arg17[%c832, %c0_40] : memref<1120x49xf32, #tpu.memory_space<vmem>>, vector<32x49xf32>
    tpu.vector_store %arg17[%c832, %c0_40], %26 {strides = array<i32>} : memref<1120x49xf32, #tpu.memory_space<vmem>>, vector<32x49xf32>,
    %c0_41 = arith.constant 0 : index
    %c0_42 = arith.constant 0 : index
    %28 = vector.load %arg10[%c0_41, %c0_42] : memref<32x49xf32, #tpu.memory_space<vmem>>, vector<32x49xf32>
    %c864 = arith.constant 864 : index
    %c0_43 = arith.constant 0 : index
    %29 = vector.load %arg17[%c864, %c0_43] : memref<1120x49xf32, #tpu.memory_space<vmem>>, vector<32x49xf32>
    tpu.vector_store %arg17[%c864, %c0_43], %28 {strides = array<i32>} : memref<1120x49xf32, #tpu.memory_space<vmem>>, vector<32x49xf32>,
    %c0_44 = arith.constant 0 : index
    %c0_45 = arith.constant 0 : index
    %30 = vector.load %arg11[%c0_44, %c0_45] : memref<32x49xf32, #tpu.memory_space<vmem>>, vector<32x49xf32>
    %c896 = arith.constant 896 : index
    %c0_46 = arith.constant 0 : index
    %31 = vector.load %arg17[%c896, %c0_46] : memref<1120x49xf32, #tpu.memory_space<vmem>>, vector<32x49xf32>
    tpu.vector_store %arg17[%c896, %c0_46], %30 {strides = array<i32>} : memref<1120x49xf32, #tpu.memory_space<vmem>>, vector<32x49xf32>,
    %c0_47 = arith.constant 0 : index
    %c0_48 = arith.constant 0 : index
    %32 = vector.load %arg12[%c0_47, %c0_48] : memref<32x49xf32, #tpu.memory_space<vmem>>, vector<32x49xf32>
    %c928 = arith.constant 928 : index
    %c0_49 = arith.constant 0 : index
    %33 = vector.load %arg17[%c928, %c0_49] : memref<1120x49xf32, #tpu.memory_space<vmem>>, vector<32x49xf32>
    tpu.vector_store %arg17[%c928, %c0_49], %32 {strides = array<i32>} : memref<1120x49xf32, #tpu.memory_space<vmem>>, vector<32x49xf32>,
    %c0_50 = arith.constant 0 : index
    %c0_51 = arith.constant 0 : index
    %34 = vector.load %arg13[%c0_50, %c0_51] : memref<32x49xf32, #tpu.memory_space<vmem>>, vector<32x49xf32>
    %c960 = arith.constant 960 : index
    %c0_52 = arith.constant 0 : index
    %35 = vector.load %arg17[%c960, %c0_52] : memref<1120x49xf32, #tpu.memory_space<vmem>>, vector<32x49xf32>
    tpu.vector_store %arg17[%c960, %c0_52], %34 {strides = array<i32>} : memref<1120x49xf32, #tpu.memory_space<vmem>>, vector<32x49xf32>,
    %c0_53 = arith.constant 0 : index
    %c0_54 = arith.constant 0 : index
    %36 = vector.load %arg14[%c0_53, %c0_54] : memref<32x49xf32, #tpu.memory_space<vmem>>, vector<32x49xf32>
    %c992 = arith.constant 992 : index
    %c0_55 = arith.constant 0 : index
    %37 = vector.load %arg17[%c992, %c0_55] : memref<1120x49xf32, #tpu.memory_space<vmem>>, vector<32x49xf32>
    tpu.vector_store %arg17[%c992, %c0_55], %36 {strides = array<i32>} : memref<1120x49xf32, #tpu.memory_space<vmem>>, vector<32x49xf32>,
    %c0_56 = arith.constant 0 : index
    %c0_57 = arith.constant 0 : index
    %38 = vector.load %arg15[%c0_56, %c0_57] : memref<32x49xf32, #tpu.memory_space<vmem>>, vector<32x49xf32>
    %c1024 = arith.constant 1024 : index
    %c0_58 = arith.constant 0 : index
    %39 = vector.load %arg17[%c1024, %c0_58] : memref<1120x49xf32, #tpu.memory_space<vmem>>, vector<32x49xf32>
    tpu.vector_store %arg17[%c1024, %c0_58], %38 {strides = array<i32>} : memref<1120x49xf32, #tpu.memory_space<vmem>>, vector<32x49xf32>,
    %c0_59 = arith.constant 0 : index
    %c0_60 = arith.constant 0 : index
    %40 = vector.load %arg16[%c0_59, %c0_60] : memref<32x49xf32, #tpu.memory_space<vmem>>, vector<32x49xf32>
    %c1088 = arith.constant 1088 : index
    %c0_61 = arith.constant 0 : index
    %41 = vector.load %arg17[%c1088, %c0_61] : memref<1120x49xf32, #tpu.memory_space<vmem>>, vector<32x49xf32>
    tpu.vector_store %arg17[%c1088, %c0_61], %40 {strides = array<i32>} : memref<1120x49xf32, #tpu.memory_space<vmem>>, vector<32x49xf32>,
    return
  }
}

</mosaic_0001>

<bundles_post_ra>
// kernel: forward.1
= control target key start
LH: loop header
LB: loop body
LE: loop exit
PB: predicated region body
PF: predicated region fallthrough
CT: control target
= control target key end

     0   :  { %vm661_vm0 = vcmask 400384   ;;  %s2806_s0 = inlined_call_operand.vmem [shape: f32[1152,49], index: 0, kind: input, shape index: {}]   ;;  %s2807_s1 = inlined_call_operand.vmem [shape: f32[32,1152], index: 1, kind: input, shape index: {}]   ;;  %s2808_s2 = inlined_call_operand.vmem [shape: f32[640,49], index: 2, kind: input, shape index: {}]   ;;  %s2809_s17 = inlined_call_operand.vmem [shape: f32[1120,49], index: 17, kind: output, shape index: {}]   ;;  %s2810_s3 = inlined_call_operand.vmem [shape: f32[32,49], index: 3, kind: input, shape index: {}]   ;;  %s2811_s4 = inlined_call_operand.vmem [shape: f32[32,49], index: 4, kind: input, shape index: {}]   ;;  %s2812_s5 = inlined_call_operand.vmem [shape: f32[32,49], index: 5, kind: input, shape index: {}]   ;;  %s2813_s6 = inlined_call_operand.vmem [shape: f32[32,49], index: 6, kind: input, shape index: {}]   ;;  %s2814_s7 = inlined_call_operand.vmem [shape: f32[32,49], index: 7, kind: input, shape index: {}]   ;;  %s2815_s8 = inlined_call_operand.vmem [shape: f32[32,49], index: 8, kind: input, shape index: {}]   ;;  %s2816_s9 = inlined_call_operand.vmem [shape: f32[32,49], index: 9, kind: input, shape index: {}]   ;;  %s2817_s10 = inlined_call_operand.vmem [shape: f32[32,49], index: 10, kind: input, shape index: {}]   ;;  %s2818_s11 = inlined_call_operand.vmem [shape: f32[32,49], index: 11, kind: input, shape index: {}]   ;;  %s2819_s12 = inlined_call_operand.vmem [shape: f32[32,49], index: 12, kind: input, shape index: {}]   ;;  %s2820_s13 = inlined_call_operand.vmem [shape: f32[32,49], index: 13, kind: input, shape index: {}]   ;;  %s2821_s14 = inlined_call_operand.vmem [shape: f32[32,49], index: 14, kind: input, shape index: {}]   ;;  %s2822_s15 = inlined_call_operand.vmem [shape: f32[32,49], index: 15, kind: input, shape index: {}]   ;;  %s2823_s16 = inlined_call_operand.vmem [shape: f32[32,49], index: 16, kind: input, shape index: {}]  }
   0x1   :  { %2826 = sst [smem:[#allocation2_spill]] %s2806_s0 }
   0x2   :  { %2827 = sst [smem:[#allocation3_spill]] %s2807_s1 }
   0x3   :  { %s2828_s26 = sld [smem:[#allocation2_spill]] }
   0x4   :  { %s2829_s27 = sld [smem:[#allocation3_spill]] }
   0x9   :  { %v123_v0 = vld [vmem:[%s2828_s26 + $0xf8] sm:$0xff]  ;;  %v122_v4 = vld [vmem:[%s2828_s26 + $0xf0] sm:$0xff]  ;;  %v121_v8 = vld [vmem:[%s2828_s26 + $0xe8] sm:$0xff] }
   0xa   :  { %v155_v1 = vld [vmem:[%s2828_s26 + $0x1f8] sm:$0xff]  ;;  %942 = vmatprep.subr.mxu0 %v123_v0  ;;  %v154_v5 = vld [vmem:[%s2828_s26 + $0x1f0] sm:$0xff]  ;;  %v153_v9 = vld [vmem:[%s2828_s26 + $0x1e8] sm:$0xff] }
   0xb   :  { %v107_v2 = vld [vmem:[%s2828_s26 + $0x78] sm:$0xff]  ;;  %986 = vmatprep.subr.mxu1 %v155_v1  ;;  %v106_v6 = vld [vmem:[%s2828_s26 + $0x70] sm:$0xff]  ;;  %v105_v10 = vld [vmem:[%s2828_s26 + $0x68] sm:$0xff] }
   0xc   :  { %v139_v3 = vld [vmem:[%s2828_s26 + $0x178] sm:$0xff]  ;;  %943 = vmatpush3.msra.mxu0 %v107_v2  ;;  %v138_v7 = vld [vmem:[%s2828_s26 + $0x170] sm:$0xff]  ;;  %v137_v11 = vld [vmem:[%s2828_s26 + $0x168] sm:$0xff] }
   0xd   :  { %987 = vmatpush3.msra.mxu1 %v139_v3  ;;  %944 = vmatprep.subr.mxu0 %v122_v4  ;;  %v120_v12 = vld [vmem:[%s2828_s26 + $0xe0] sm:$0xff]  ;;  %v119_v16 = vld [vmem:[%s2828_s26 + $0xd8] sm:$0xff]  ;;  %v118_v20 = vld [vmem:[%s2828_s26 + $0xd0] sm:$0xff] }
   0xe   :  { %988 = vmatprep.subr.mxu1 %v154_v5  ;;  %945 = vmatpush3.msra.mxu0 %v106_v6  ;;  %v152_v13 = vld [vmem:[%s2828_s26 + $0x1e0] sm:$0xff]  ;;  %v151_v17 = vld [vmem:[%s2828_s26 + $0x1d8] sm:$0xff]  ;;  %v150_v21 = vld [vmem:[%s2828_s26 + $0x1d0] sm:$0xff] }
   0xf   :  { %989 = vmatpush3.msra.mxu1 %v138_v7  ;;  %946 = vmatprep.subr.mxu0 %v121_v8  ;;  %v104_v14 = vld [vmem:[%s2828_s26 + $0x60] sm:$0xff]  ;;  %v103_v18 = vld [vmem:[%s2828_s26 + $0x58] sm:$0xff]  ;;  %v102_v22 = vld [vmem:[%s2828_s26 + $0x50] sm:$0xff] }
  0x10   :  { %990 = vmatprep.subr.mxu1 %v153_v9  ;;  %v136_v15 = vld [vmem:[%s2828_s26 + $0x160] sm:$0xff]  ;;  %947 = vmatpush3.msra.mxu0 %v105_v10  ;;  %v135_v19 = vld [vmem:[%s2828_s26 + $0x158] sm:$0xff]  ;;  %v134_v23 = vld [vmem:[%s2828_s26 + $0x150] sm:$0xff] }
  0x11   :  { %991 = vmatpush3.msra.mxu1 %v137_v11  ;;  %948 = vmatprep.subr.mxu0 %v120_v12  ;;  %v117_v24 = vld [vmem:[%s2828_s26 + $0xc8] sm:$0xff]  ;;  %v116_v28 = vld [vmem:[%s2828_s26 + $0xc0] sm:$0xff]  ;;  %v115_v32 = vld [vmem:[%s2828_s26 + $0xb8] sm:$0xff] }
  0x12   :  { %992 = vmatprep.subr.mxu1 %v152_v13  ;;  %949 = vmatpush3.msra.mxu0 %v104_v14  ;;  %v149_v25 = vld [vmem:[%s2828_s26 + $0x1c8] sm:$0xff]  ;;  %v148_v29 = vld [vmem:[%s2828_s26 + $0x1c0] sm:$0xff]  ;;  %v147_v33 = vld [vmem:[%s2828_s26 + $0x1b8] sm:$0xff] }
  0x13   :  { %993 = vmatpush3.msra.mxu1 %v136_v15  ;;  %950 = vmatprep.subr.mxu0 %v119_v16  ;;  %v101_v26 = vld [vmem:[%s2828_s26 + $0x48] sm:$0xff]  ;;  %v100_v30 = vld [vmem:[%s2828_s26 + $0x40] sm:$0xff]  ;;  %v99_v34 = vld [vmem:[%s2828_s26 + $0x38] sm:$0xff] }
  0x14   :  { %994 = vmatprep.subr.mxu1 %v151_v17  ;;  %951 = vmatpush3.msra.mxu0 %v103_v18  ;;  %v133_v27 = vld [vmem:[%s2828_s26 + $0x148] sm:$0xff]  ;;  %v132_v31 = vld [vmem:[%s2828_s26 + $0x140] sm:$0xff]  ;;  %v131_v35 = vld [vmem:[%s2828_s26 + $0x138] sm:$0xff] }
  0x15   :  { %995 = vmatpush3.msra.mxu1 %v135_v19  ;;  %952 = vmatprep.subr.mxu0 %v118_v20  ;;  %v114_v36 = vld [vmem:[%s2828_s26 + $0xb0] sm:$0xff]  ;;  %v113_v40 = vld [vmem:[%s2828_s26 + $0xa8] sm:$0xff]  ;;  %v112_v44 = vld [vmem:[%s2828_s26 + $0xa0] sm:$0xff] }
  0x16   :  { %996 = vmatprep.subr.mxu1 %v150_v21  ;;  %953 = vmatpush3.msra.mxu0 %v102_v22  ;;  %v146_v37 = vld [vmem:[%s2828_s26 + $0x1b0] sm:$0xff]  ;;  %v145_v41 = vld [vmem:[%s2828_s26 + $0x1a8] sm:$0xff]  ;;  %v144_v45 = vld [vmem:[%s2828_s26 + $0x1a0] sm:$0xff] }
  0x17   :  { %997 = vmatpush3.msra.mxu1 %v134_v23  ;;  %954 = vmatprep.subr.mxu0 %v117_v24  ;;  %v98_v38 = vld [vmem:[%s2828_s26 + $0x30] sm:$0xff]  ;;  %v97_v42 = vld [vmem:[%s2828_s26 + $0x28] sm:$0xff]  ;;  %v96_v46 = vld [vmem:[%s2828_s26 + $0x20] sm:$0xff] }
  0x18   :  { %998 = vmatprep.subr.mxu1 %v149_v25  ;;  %955 = vmatpush3.msra.mxu0 %v101_v26  ;;  %v130_v39 = vld [vmem:[%s2828_s26 + $0x130] sm:$0xff]  ;;  %v129_v43 = vld [vmem:[%s2828_s26 + $0x128] sm:$0xff]  ;;  %v128_v47 = vld [vmem:[%s2828_s26 + $0x120] sm:$0xff] }
  0x19   :  { %999 = vmatpush3.msra.mxu1 %v133_v27  ;;  %956 = vmatprep.subr.mxu0 %v116_v28  ;;  %v111_v48 = vld [vmem:[%s2828_s26 + $0x98] sm:$0xff]  ;;  %v110_v52 = vld [vmem:[%s2828_s26 + $0x90] sm:$0xff]  ;;  %v109_v56 = vld [vmem:[%s2828_s26 + $0x88] sm:$0xff] }
  0x1a   :  { %1000 = vmatprep.subr.mxu1 %v148_v29  ;;  %957 = vmatpush3.msra.mxu0 %v100_v30  ;;  %v143_v49 = vld [vmem:[%s2828_s26 + $0x198] sm:$0xff]  ;;  %v142_v53 = vld [vmem:[%s2828_s26 + $0x190] sm:$0xff]  ;;  %v141_v57 = vld [vmem:[%s2828_s26 + $0x188] sm:$0xff] }
  0x1b   :  { %1001 = vmatpush3.msra.mxu1 %v132_v31  ;;  %958 = vmatprep.subr.mxu0 %v115_v32  ;;  %v95_v50 = vld [vmem:[%s2828_s26 + $0x18] sm:$0xff]  ;;  %v94_v54 = vld [vmem:[%s2828_s26 + $0x10] sm:$0xff]  ;;  %v93_v58 = vld [vmem:[%s2828_s26 + $0x8] sm:$0xff] }
  0x1c   :  { %1002 = vmatprep.subr.mxu1 %v147_v33  ;;  %959 = vmatpush3.msra.mxu0 %v99_v34  ;;  %v127_v51 = vld [vmem:[%s2828_s26 + $0x118] sm:$0xff]  ;;  %v126_v55 = vld [vmem:[%s2828_s26 + $0x110] sm:$0xff]  ;;  %v125_v59 = vld [vmem:[%s2828_s26 + $0x108] sm:$0xff] }
  0x1d   :  { %1003 = vmatpush3.msra.mxu1 %v131_v35  ;;  %960 = vmatprep.subr.mxu0 %v114_v36  ;;  %v108_v60 = vld [vmem:[%s2828_s26 + $0x80] sm:$0xff]  ;;  %v57_v63 = vld [vmem:[%s2829_s27 + $0x8] sm:$0xff]  ;;  %v59_v1 = vld [vmem:[%s2829_s27 + $0x18] sm:$0xff] }
  0x1e   :  { %1004 = vmatprep.subr.mxu1 %v146_v37  ;;  %961 = vmatpush3.msra.mxu0 %v98_v38  ;;  %v140_v61 = vld [vmem:[%s2828_s26 + $0x180] sm:$0xff]  ;;  %v58_v3 = vld [vmem:[%s2829_s27 + $0x10] sm:$0xff]  ;;  %v187_v4 = vld [vmem:[%s2828_s26 + $0x2f8] sm:$0xff] }
  0x1f   :  { %1005 = vmatpush3.msra.mxu1 %v130_v39  ;;  %962 = vmatprep.subr.mxu0 %v113_v40  ;;  %v92_v62 = vld [vmem:[%s2828_s26] sm:$0xff]  ;;  %v219_v5 = vld [vmem:[%s2828_s26 + $0x3f8] sm:$0xff]  ;;  %v186_v8 = vld [vmem:[%s2828_s26 + $0x2f0] sm:$0xff] }
  0x20   :  { %1006 = vmatprep.subr.mxu1 %v145_v41  ;;  %963 = vmatpush3.msra.mxu0 %v97_v42  ;;  %v124_v0 = vld [vmem:[%s2828_s26 + $0x100] sm:$0xff]  ;;  %v171_v6 = vld [vmem:[%s2828_s26 + $0x278] sm:$0xff]  ;;  %v218_v9 = vld [vmem:[%s2828_s26 + $0x3f0] sm:$0xff] }
  0x21   :  { %1007 = vmatpush3.msra.mxu1 %v129_v43  ;;  %964 = vmatprep.subr.mxu0 %v112_v44  ;;  %v56_v2 = vld [vmem:[%s2829_s27] sm:$0xff]  ;;  %v203_v7 = vld [vmem:[%s2828_s26 + $0x378] sm:$0xff]  ;;  %v170_v10 = vld [vmem:[%s2828_s26 + $0x270] sm:$0xff] }
  0x22   :  { %1008 = vmatprep.subr.mxu1 %v144_v45  ;;  %965 = vmatpush3.msra.mxu0 %v96_v46  ;;  %v202_v11 = vld [vmem:[%s2828_s26 + $0x370] sm:$0xff]  ;;  %v185_v12 = vld [vmem:[%s2828_s26 + $0x2e8] sm:$0xff]  ;;  %v184_v16 = vld [vmem:[%s2828_s26 + $0x2e0] sm:$0xff] }
  0x23   :  { %1009 = vmatpush3.msra.mxu1 %v128_v47  ;;  %966 = vmatprep.subr.mxu0 %v111_v48  ;;  %v217_v13 = vld [vmem:[%s2828_s26 + $0x3e8] sm:$0xff]  ;;  %v216_v17 = vld [vmem:[%s2828_s26 + $0x3e0] sm:$0xff]  ;;  %v183_v20 = vld [vmem:[%s2828_s26 + $0x2d8] sm:$0xff] }
  0x24   :  { %1010 = vmatprep.subr.mxu1 %v143_v49  ;;  %967 = vmatpush3.msra.mxu0 %v95_v50  ;;  %v169_v14 = vld [vmem:[%s2828_s26 + $0x268] sm:$0xff]  ;;  %v168_v18 = vld [vmem:[%s2828_s26 + $0x260] sm:$0xff]  ;;  %v215_v21 = vld [vmem:[%s2828_s26 + $0x3d8] sm:$0xff] }
  0x25   :  { %1011 = vmatpush3.msra.mxu1 %v127_v51  ;;  %968 = vmatprep.subr.mxu0 %v110_v52  ;;  %v201_v15 = vld [vmem:[%s2828_s26 + $0x368] sm:$0xff]  ;;  %v200_v19 = vld [vmem:[%s2828_s26 + $0x360] sm:$0xff]  ;;  %v167_v22 = vld [vmem:[%s2828_s26 + $0x258] sm:$0xff] }
  0x26   :  { %1012 = vmatprep.subr.mxu1 %v142_v53  ;;  %969 = vmatpush3.msra.mxu0 %v94_v54  ;;  %v199_v23 = vld [vmem:[%s2828_s26 + $0x358] sm:$0xff]  ;;  %v182_v24 = vld [vmem:[%s2828_s26 + $0x2d0] sm:$0xff]  ;;  %v181_v28 = vld [vmem:[%s2828_s26 + $0x2c8] sm:$0xff] }
  0x27   :  { %1013 = vmatpush3.msra.mxu1 %v126_v55  ;;  %970 = vmatprep.subr.mxu0 %v109_v56  ;;  %v214_v25 = vld [vmem:[%s2828_s26 + $0x3d0] sm:$0xff]  ;;  %v213_v29 = vld [vmem:[%s2828_s26 + $0x3c8] sm:$0xff]  ;;  %v180_v32 = vld [vmem:[%s2828_s26 + $0x2c0] sm:$0xff] }
  0x28   :  { %1014 = vmatprep.subr.mxu1 %v141_v57  ;;  %971 = vmatpush3.msra.mxu0 %v93_v58  ;;  %v166_v26 = vld [vmem:[%s2828_s26 + $0x250] sm:$0xff]  ;;  %v165_v30 = vld [vmem:[%s2828_s26 + $0x248] sm:$0xff]  ;;  %v212_v33 = vld [vmem:[%s2828_s26 + $0x3c0] sm:$0xff] }
  0x29   :  { %1015 = vmatpush3.msra.mxu1 %v125_v59  ;;  %972 = vmatprep.subr.mxu0 %v108_v60  ;;  %v198_v27 = vld [vmem:[%s2828_s26 + $0x350] sm:$0xff]  ;;  %v197_v31 = vld [vmem:[%s2828_s26 + $0x348] sm:$0xff]  ;;  %v164_v34 = vld [vmem:[%s2828_s26 + $0x240] sm:$0xff] }
  0x2a   :  { %1016 = vmatprep.subr.mxu1 %v140_v61  ;;  %973 = vmatpush3.msra.mxu0 %v92_v62  ;;  %v196_v35 = vld [vmem:[%s2828_s26 + $0x340] sm:$0xff]  ;;  %v179_v36 = vld [vmem:[%s2828_s26 + $0x2b8] sm:$0xff]  ;;  %v66_v40 = vld [vmem:[%s2829_s27 + $0x50] sm:$0xff] }
  0x2b   :  { %300 = vmatprep.mubr.f32.mxu0 %v57_v63  ;;  %1017 = vmatpush3.msra.mxu1 %v124_v0  ;;  %v211_v37 = vld [vmem:[%s2828_s26 + $0x3b8] sm:$0xff]  ;;  %v68_v41 = vld [vmem:[%s2829_s27 + $0x60] sm:$0xff]  ;;  %v178_v42 = vld [vmem:[%s2828_s26 + $0x2b0] sm:$0xff] }
  0x2c   :  { %385 = vmatprep.mubr.f32.mxu1 %v59_v1  ;;  %301 = vmatmul.mubr.f32.vlgmr.msra.gmra.mxu0 %v56_v2  ;;  %v163_v38 = vld [vmem:[%s2828_s26 + $0x238] sm:$0xff]  ;;  %v210_v43 = vld [vmem:[%s2828_s26 + $0x3b0] sm:$0xff]  ;;  %v65_v44 = vld [vmem:[%s2829_s27 + $0x48] sm:$0xff] }
  0x2d   :  { %386 = vmatmul.mubr.f32.vlgmr.msra.gmra.mxu1 %v58_v3  ;;  %1030 = vmatprep.subr.mxu0 %v187_v4  ;;  %v195_v39 = vld [vmem:[%s2828_s26 + $0x338] sm:$0xff]  ;;  %v162_v46 = vld [vmem:[%s2828_s26 + $0x230] sm:$0xff]  ;;  %v177_v48 = vld [vmem:[%s2828_s26 + $0x2a8] sm:$0xff] }
  0x2e   :  { %1074 = vmatprep.subr.mxu1 %v219_v5  ;;  %1031 = vmatpush3.msra.mxu0 %v171_v6  ;;  %v67_v45 = vld [vmem:[%s2829_s27 + $0x58] sm:$0xff]  ;;  %v194_v47 = vld [vmem:[%s2828_s26 + $0x330] sm:$0xff]  ;;  %v209_v49 = vld [vmem:[%s2828_s26 + $0x3a8] sm:$0xff] }
  0x2f   :  { %1075 = vmatpush3.msra.mxu1 %v203_v7  ;;  %1032 = vmatprep.subr.mxu0 %v186_v8  ;;  %v161_v50 = vld [vmem:[%s2828_s26 + $0x228] sm:$0xff]  ;;  %v75_v52 = vld [vmem:[%s2829_s27 + $0x98] sm:$0xff]  ;;  %v176_v54 = vld [vmem:[%s2828_s26 + $0x2a0] sm:$0xff] }
  0x30   :  { %1076 = vmatprep.subr.mxu1 %v218_v9  ;;  %1033 = vmatpush3.msra.mxu0 %v170_v10  ;;  %v193_v51 = vld [vmem:[%s2828_s26 + $0x328] sm:$0xff]  ;;  %v208_v55 = vld [vmem:[%s2828_s26 + $0x3a0] sm:$0xff]  ;;  %v74_v56 = vld [vmem:[%s2829_s27 + $0x90] sm:$0xff] }
  0x31   :  { %1077 = vmatpush3.msra.mxu1 %v202_v11  ;;  %1034 = vmatprep.subr.mxu0 %v185_v12  ;;  %v77_v53 = vld [vmem:[%s2829_s27 + $0xa8] sm:$0xff]  ;;  %v76_v57 = vld [vmem:[%s2829_s27 + $0xa0] sm:$0xff]  ;;  %v175_v60 = vld [vmem:[%s2828_s26 + $0x298] sm:$0xff] }
  0x32   :  { %1078 = vmatprep.subr.mxu1 %v217_v13  ;;  %1035 = vmatpush3.msra.mxu0 %v169_v14  ;;  %v160_v58 = vld [vmem:[%s2828_s26 + $0x220] sm:$0xff]  ;;  %v207_v61 = vld [vmem:[%s2828_s26 + $0x398] sm:$0xff]  ;;  %v86_v1 = vld [vmem:[%s2829_s27 + $0xf0] sm:$0xff] }
  0x33   :  { %1079 = vmatpush3.msra.mxu1 %v201_v15  ;;  %1036 = vmatprep.subr.mxu0 %v184_v16  ;;  %v192_v59 = vld [vmem:[%s2828_s26 + $0x320] sm:$0xff]  ;;  %v159_v62 = vld [vmem:[%s2828_s26 + $0x218] sm:$0xff]  ;;  %v174_v2 = vld [vmem:[%s2828_s26 + $0x290] sm:$0xff] }
  0x34   :  { %1080 = vmatprep.subr.mxu1 %v216_v17  ;;  %1037 = vmatpush3.msra.mxu0 %v168_v18  ;;  %v191_v63 = vld [vmem:[%s2828_s26 + $0x318] sm:$0xff]  ;;  %v84_v0 = vld [vmem:[%s2829_s27 + $0xe0] sm:$0xff]  ;;  %v206_v3 = vld [vmem:[%s2828_s26 + $0x390] sm:$0xff] }
  0x35   :  { %1081 = vmatpush3.msra.mxu1 %v200_v19  ;;  %1038 = vmatprep.subr.mxu0 %v183_v20  ;;  %v83_v4 = vld [vmem:[%s2829_s27 + $0xd8] sm:$0xff]  ;;  %v85_v5 = vld [vmem:[%s2829_s27 + $0xe8] sm:$0xff]  ;;  %v158_v6 = vld [vmem:[%s2828_s26 + $0x210] sm:$0xff] }
  0x36   :  { %1082 = vmatprep.subr.mxu1 %v215_v21  ;;  %1039 = vmatpush3.msra.mxu0 %v167_v22  ;;  %v190_v7 = vld [vmem:[%s2828_s26 + $0x310] sm:$0xff]  ;;  %v173_v8 = vld [vmem:[%s2828_s26 + $0x288] sm:$0xff]  ;;  %v172_v12 = vld [vmem:[%s2828_s26 + $0x280] sm:$0xff] }
  0x37   :  { %1083 = vmatpush3.msra.mxu1 %v199_v23  ;;  %1040 = vmatprep.subr.mxu0 %v182_v24  ;;  %v205_v9 = vld [vmem:[%s2828_s26 + $0x388] sm:$0xff]  ;;  %v204_v13 = vld [vmem:[%s2828_s26 + $0x380] sm:$0xff]  ;;  %v63_v17 = vld [vmem:[%s2829_s27 + $0x38] sm:$0xff] }
  0x38   :  { %1084 = vmatprep.subr.mxu1 %v214_v25  ;;  %1041 = vmatpush3.msra.mxu0 %v166_v26  ;;  %v157_v10 = vld [vmem:[%s2828_s26 + $0x208] sm:$0xff]  ;;  %v156_v14 = vld [vmem:[%s2828_s26 + $0x200] sm:$0xff]  ;;  %v62_v19 = vld [vmem:[%s2829_s27 + $0x30] sm:$0xff] }
  0x39   :  { %1085 = vmatpush3.msra.mxu1 %v198_v27  ;;  %1042 = vmatprep.subr.mxu0 %v181_v28  ;;  %v189_v11 = vld [vmem:[%s2828_s26 + $0x308] sm:$0xff]  ;;  %v188_v16 = vld [vmem:[%s2828_s26 + $0x300] sm:$0xff]  ;;  %v235_v20 = vld [vmem:[%s2828_s26 + $0x478] sm:$0xff] }
  0x3a   :  { %1086 = vmatprep.subr.mxu1 %v213_v29  ;;  %1043 = vmatpush3.msra.mxu0 %v165_v30  ;;  %v61_v15 = vld [vmem:[%s2829_s27 + $0x28] sm:$0xff]  ;;  %v60_v18 = vld [vmem:[%s2829_s27 + $0x20] sm:$0xff]  ;;  %v234_v21 = vld [vmem:[%s2828_s26 + $0x470] sm:$0xff] }
  0x3b   :  { %1087 = vmatpush3.msra.mxu1 %v197_v31  ;;  %1044 = vmatprep.subr.mxu0 %v180_v32  ;;  %v70_v22 = vld [vmem:[%s2829_s27 + $0x70] sm:$0xff]  ;;  %v69_v23 = vld [vmem:[%s2829_s27 + $0x68] sm:$0xff]  ;;  %v72_v25 = vld [vmem:[%s2829_s27 + $0x80] sm:$0xff] }
  0x3c   :  { %1088 = vmatprep.subr.mxu1 %v212_v33  ;;  %1045 = vmatpush3.msra.mxu0 %v164_v34  ;;  %v233_v24 = vld [vmem:[%s2828_s26 + $0x468] sm:$0xff]  ;;  %v232_v26 = vld [vmem:[%s2828_s26 + $0x460] sm:$0xff]  ;;  %v71_v27 = vld [vmem:[%s2829_s27 + $0x78] sm:$0xff] }
  0x3d   :  { %1089 = vmatpush3.msra.mxu1 %v196_v35  ;;  %1046 = vmatprep.subr.mxu0 %v179_v36  ;;  %v79_v28 = vld [vmem:[%s2829_s27 + $0xb8] sm:$0xff]  ;;  %v78_v29 = vld [vmem:[%s2829_s27 + $0xb0] sm:$0xff]  ;;  %v81_v31 = vld [vmem:[%s2829_s27 + $0xc8] sm:$0xff] }
  0x3e   :  { %1090 = vmatprep.subr.mxu1 %v211_v37  ;;  %1047 = vmatpush3.msra.mxu0 %v163_v38  ;;  %v231_v30 = vld [vmem:[%s2828_s26 + $0x458] sm:$0xff]  ;;  %v230_v32 = vld [vmem:[%s2828_s26 + $0x450] sm:$0xff]  ;;  %v80_v33 = vld [vmem:[%s2829_s27 + $0xc0] sm:$0xff] }
  0x3f   :  { %1091 = vmatpush3.msra.mxu1 %v195_v39  ;;  %305 = vmatprep.mubr.f32.mxu0 %v66_v40  ;;  %v88_v34 = vld [vmem:[%s2829_s27 + $0x100] sm:$0xff]  ;;  %v87_v35 = vld [vmem:[%s2829_s27 + $0xf8] sm:$0xff]  ;;  %v229_v36 = vld [vmem:[%s2828_s26 + $0x448] sm:$0xff] }
  0x40   :  { %390 = vmatprep.mubr.f32.mxu1 %v68_v41  ;;  %1048 = vmatprep.subr.mxu0 %v178_v42  ;;  %v90_v37 = vld [vmem:[%s2829_s27 + $0x110] sm:$0xff]  ;;  %v228_v38 = vld [vmem:[%s2828_s26 + $0x440] sm:$0xff]  ;;  %v89_v39 = vld [vmem:[%s2829_s27 + $0x108] sm:$0xff] }
  0x41   :  { %1092 = vmatprep.subr.mxu1 %v210_v43  ;;  %306 = vmatmul.mubr.f32.gmra.mxu0 %v65_v44  ;;  %v227_v40 = vld [vmem:[%s2828_s26 + $0x438] sm:$0xff]  ;;  %v226_v41 = vld [vmem:[%s2828_s26 + $0x430] sm:$0xff]  ;;  %v225_v42 = vld [vmem:[%s2828_s26 + $0x428] sm:$0xff] }
  0x42   :  { %391 = vmatmul.mubr.f32.gmra.mxu1 %v67_v45  ;;  %1049 = vmatpush3.msra.mxu0 %v162_v46  ;;  %v224_v43 = vld [vmem:[%s2828_s26 + $0x420] sm:$0xff]  ;;  %v223_v44 = vld [vmem:[%s2828_s26 + $0x418] sm:$0xff]  ;;  %v222_v45 = vld [vmem:[%s2828_s26 + $0x410] sm:$0xff] }
  0x43   :  { %1093 = vmatpush3.msra.mxu1 %v194_v47  ;;  %1050 = vmatprep.subr.mxu0 %v177_v48  ;;  %v221_v46 = vld [vmem:[%s2828_s26 + $0x408] sm:$0xff]  ;;  %v220_v47 = vld [vmem:[%s2828_s26 + $0x400] sm:$0xff] }
  0x44   :  { %1094 = vmatprep.subr.mxu1 %v209_v49  ;;  %1051 = vmatpush3.msra.mxu0 %v161_v50  ;;  %v64_v48 = vld [vmem:[%s2829_s27 + $0x40] sm:$0xff]  ;;  %v82_v49 = vld [vmem:[%s2829_s27 + $0xd0] sm:$0xff]  ;;  %v73_v50 = vld [vmem:[%s2829_s27 + $0x88] sm:$0xff] }
  0x45   :  { %1095 = vmatpush3.msra.mxu1 %v193_v51  ;;  %310 = vmatprep.mubr.f32.mxu0 %v75_v52  ;;  %v91_v51 = vld [vmem:[%s2829_s27 + $0x118] sm:$0xff]  ;;  %v666_v52 = vld [vmem:[%s2808_s2] sm:$0xff] }
  0x46   :  { %395 = vmatprep.mubr.f32.mxu1 %v77_v53  ;;  %1052 = vmatprep.subr.mxu0 %v176_v54  ;;  %v667_v53 = vld [vmem:[%s2808_s2 + $0x8] sm:$0xff]  ;;  %v668_v54 = vld [vmem:[%s2808_s2 + $0x10] sm:$0xff]  ;;  %682 = vst.msk [vmem:[%s2809_s17] sm:$0xff] %vm661_vm0, %v666_v52  ;;  %v794_v52 = vld [vmem:[%s2808_s2 + $0x200] sm:$0xff] }
  0x47   :  { %1096 = vmatprep.subr.mxu1 %v208_v55  ;;  %311 = vmatmul.mubr.f32.gmra.mxu0 %v74_v56  ;;  %v669_v55 = vld [vmem:[%s2808_s2 + $0x18] sm:$0xff]  ;;  %v670_v56 = vld [vmem:[%s2808_s2 + $0x20] sm:$0xff]  ;;  %683 = vst.msk [vmem:[%s2809_s17 + $0x8] sm:$0xff] %vm661_vm0, %v667_v53  ;;  %684 = vst.msk [vmem:[%s2809_s17 + $0x10] sm:$0xff] %vm661_vm0, %v668_v54 }
  0x48   :  { %396 = vmatmul.mubr.f32.gmra.mxu1 %v76_v57  ;;  %1053 = vmatpush3.msra.mxu0 %v160_v58  ;;  %v671_v57 = vld [vmem:[%s2808_s2 + $0x28] sm:$0xff]  ;;  %v672_v58 = vld [vmem:[%s2808_s2 + $0x30] sm:$0xff]  ;;  %685 = vst.msk [vmem:[%s2809_s17 + $0x18] sm:$0xff] %vm661_vm0, %v669_v55  ;;  %686 = vst.msk [vmem:[%s2809_s17 + $0x20] sm:$0xff] %vm661_vm0, %v670_v56 }
  0x49   :  { %1097 = vmatpush3.msra.mxu1 %v192_v59  ;;  %1054 = vmatprep.subr.mxu0 %v175_v60  ;;  %v673_v59 = vld [vmem:[%s2808_s2 + $0x38] sm:$0xff]  ;;  %v674_v60 = vld [vmem:[%s2808_s2 + $0x40] sm:$0xff]  ;;  %687 = vst.msk [vmem:[%s2809_s17 + $0x28] sm:$0xff] %vm661_vm0, %v671_v57  ;;  %688 = vst.msk [vmem:[%s2809_s17 + $0x30] sm:$0xff] %vm661_vm0, %v672_v58 }
  0x4a   :  { %1098 = vmatprep.subr.mxu1 %v207_v61  ;;  %1055 = vmatpush3.msra.mxu0 %v159_v62  ;;  %v675_v61 = vld [vmem:[%s2808_s2 + $0x48] sm:$0xff]  ;;  %v676_v62 = vld [vmem:[%s2808_s2 + $0x50] sm:$0xff]  ;;  %689 = vst.msk [vmem:[%s2809_s17 + $0x38] sm:$0xff] %vm661_vm0, %v673_v59  ;;  %690 = vst.msk [vmem:[%s2809_s17 + $0x40] sm:$0xff] %vm661_vm0, %v674_v60 }
  0x4b   :  { %1099 = vmatpush3.msra.mxu1 %v191_v63  ;;  %315 = vmatprep.mubr.f32.mxu0 %v84_v0  ;;  %v677_v63 = vld [vmem:[%s2808_s2 + $0x58] sm:$0xff]  ;;  %v678_v0 = vld [vmem:[%s2808_s2 + $0x60] sm:$0xff]  ;;  %691 = vst.msk [vmem:[%s2809_s17 + $0x48] sm:$0xff] %vm661_vm0, %v675_v61  ;;  %692 = vst.msk [vmem:[%s2809_s17 + $0x50] sm:$0xff] %vm661_vm0, %v676_v62 }
  0x4c   :  { %400 = vmatprep.mubr.f32.mxu1 %v86_v1  ;;  %1056 = vmatprep.subr.mxu0 %v174_v2  ;;  %v679_v1 = vld [vmem:[%s2808_s2 + $0x68] sm:$0xff]  ;;  %v680_v2 = vld [vmem:[%s2808_s2 + $0x70] sm:$0xff]  ;;  %693 = vst.msk [vmem:[%s2809_s17 + $0x58] sm:$0xff] %vm661_vm0, %v677_v63  ;;  %694 = vst.msk [vmem:[%s2809_s17 + $0x60] sm:$0xff] %vm661_vm0, %v678_v0 }
  0x4d   :  { %1100 = vmatprep.subr.mxu1 %v206_v3  ;;  %316 = vmatmul.mubr.f32.gmra.mxu0 %v83_v4  ;;  %v681_v3 = vld [vmem:[%s2808_s2 + $0x78] sm:$0xff]  ;;  %695 = vst.msk [vmem:[%s2809_s17 + $0x68] sm:$0xff] %vm661_vm0, %v679_v1  ;;  %696 = vst.msk [vmem:[%s2809_s17 + $0x70] sm:$0xff] %vm661_vm0, %v680_v2  ;;  %v698_v4 = vld [vmem:[%s2808_s2 + $0x80] sm:$0xff] }
  0x4e   :  { %401 = vmatmul.mubr.f32.gmra.mxu1 %v85_v5  ;;  %1057 = vmatpush3.msra.mxu0 %v158_v6  ;;  %v699_v5 = vld [vmem:[%s2808_s2 + $0x88] sm:$0xff]  ;;  %697 = vst.msk [vmem:[%s2809_s17 + $0x78] sm:$0xff] %vm661_vm0, %v681_v3  ;;  %v700_v6 = vld [vmem:[%s2808_s2 + $0x90] sm:$0xff]  ;;  %714 = vst.msk [vmem:[%s2809_s17 + $0x80] sm:$0xff] %vm661_vm0, %v698_v4 }
  0x4f   :  { %1101 = vmatpush3.msra.mxu1 %v190_v7  ;;  %1058 = vmatprep.subr.mxu0 %v173_v8  ;;  %v701_v7 = vld [vmem:[%s2808_s2 + $0x98] sm:$0xff]  ;;  %v702_v8 = vld [vmem:[%s2808_s2 + $0xa0] sm:$0xff]  ;;  %715 = vst.msk [vmem:[%s2809_s17 + $0x88] sm:$0xff] %vm661_vm0, %v699_v5  ;;  %716 = vst.msk [vmem:[%s2809_s17 + $0x90] sm:$0xff] %vm661_vm0, %v700_v6 }
  0x50   :  { %1102 = vmatprep.subr.mxu1 %v205_v9  ;;  %1059 = vmatpush3.msra.mxu0 %v157_v10  ;;  %v703_v9 = vld [vmem:[%s2808_s2 + $0xa8] sm:$0xff]  ;;  %v704_v10 = vld [vmem:[%s2808_s2 + $0xb0] sm:$0xff]  ;;  %717 = vst.msk [vmem:[%s2809_s17 + $0x98] sm:$0xff] %vm661_vm0, %v701_v7  ;;  %718 = vst.msk [vmem:[%s2809_s17 + $0xa0] sm:$0xff] %vm661_vm0, %v702_v8 }
  0x51   :  { %1103 = vmatpush3.msra.mxu1 %v189_v11  ;;  %1060 = vmatprep.subr.mxu0 %v172_v12  ;;  %v705_v11 = vld [vmem:[%s2808_s2 + $0xb8] sm:$0xff]  ;;  %v706_v12 = vld [vmem:[%s2808_s2 + $0xc0] sm:$0xff]  ;;  %719 = vst.msk [vmem:[%s2809_s17 + $0xa8] sm:$0xff] %vm661_vm0, %v703_v9  ;;  %720 = vst.msk [vmem:[%s2809_s17 + $0xb0] sm:$0xff] %vm661_vm0, %v704_v10 }
  0x52   :  { %1104 = vmatprep.subr.mxu1 %v204_v13  ;;  %1061 = vmatpush3.msra.mxu0 %v156_v14  ;;  %v707_v13 = vld [vmem:[%s2808_s2 + $0xc8] sm:$0xff]  ;;  %v708_v14 = vld [vmem:[%s2808_s2 + $0xd0] sm:$0xff]  ;;  %721 = vst.msk [vmem:[%s2809_s17 + $0xb8] sm:$0xff] %vm661_vm0, %v705_v11  ;;  %722 = vst.msk [vmem:[%s2809_s17 + $0xc0] sm:$0xff] %vm661_vm0, %v706_v12 }
  0x53   :  { %470 = vmatprep.mubr.f32.mxu0 %v61_v15  ;;  %1105 = vmatpush3.msra.mxu1 %v188_v16  ;;  %v709_v15 = vld [vmem:[%s2808_s2 + $0xd8] sm:$0xff]  ;;  %v710_v16 = vld [vmem:[%s2808_s2 + $0xe0] sm:$0xff]  ;;  %723 = vst.msk [vmem:[%s2809_s17 + $0xc8] sm:$0xff] %vm661_vm0, %v707_v13  ;;  %724 = vst.msk [vmem:[%s2809_s17 + $0xd0] sm:$0xff] %vm661_vm0, %v708_v14 }
  0x54   :  { %555 = vmatprep.mubr.f32.mxu1 %v63_v17  ;;  %471 = vmatmul.mubr.f32.vlgmr.msra.gmra.mxu0 %v60_v18  ;;  %v711_v17 = vld [vmem:[%s2808_s2 + $0xe8] sm:$0xff]  ;;  %v712_v18 = vld [vmem:[%s2808_s2 + $0xf0] sm:$0xff]  ;;  %725 = vst.msk [vmem:[%s2809_s17 + $0xd8] sm:$0xff] %vm661_vm0, %v709_v15  ;;  %726 = vst.msk [vmem:[%s2809_s17 + $0xe0] sm:$0xff] %vm661_vm0, %v710_v16 }
  0x55   :  { %556 = vmatmul.mubr.f32.vlgmr.msra.gmra.mxu1 %v62_v19  ;;  %1138 = vmatprep.subr.mxu0 %v235_v20  ;;  %v713_v19 = vld [vmem:[%s2808_s2 + $0xf8] sm:$0xff]  ;;  %727 = vst.msk [vmem:[%s2809_s17 + $0xe8] sm:$0xff] %vm661_vm0, %v711_v17  ;;  %728 = vst.msk [vmem:[%s2809_s17 + $0xf0] sm:$0xff] %vm661_vm0, %v712_v18  ;;  %v795_v53 = vld [vmem:[%s2808_s2 + $0x208] sm:$0xff] }
  0x56   :  { %1176 = vmatprep.subr.mxu1 %v235_v20  ;;  %1139 = vmatpush3.msra.mxu0 %v235_v20  ;;  %729 = vst.msk [vmem:[%s2809_s17 + $0xf8] sm:$0xff] %vm661_vm0, %v713_v19  ;;  %v796_v54 = vld [vmem:[%s2808_s2 + $0x210] sm:$0xff]  ;;  %v797_v55 = vld [vmem:[%s2808_s2 + $0x218] sm:$0xff]  ;;  %v798_v56 = vld [vmem:[%s2808_s2 + $0x220] sm:$0xff] }
  0x57   :  { %1192 = vmatpush3.msra.mxu1 %v235_v20  ;;  %1140 = vmatprep.subr.mxu0 %v234_v21  ;;  %v730_v20 = vld [vmem:[%s2808_s2 + $0x100] sm:$0xff]  ;;  %810 = vst.msk [vmem:[%s2809_s17 + $0x200] sm:$0xff] %vm661_vm0, %v794_v52  ;;  %811 = vst.msk [vmem:[%s2809_s17 + $0x208] sm:$0xff] %vm661_vm0, %v795_v53  ;;  %v799_v57 = vld [vmem:[%s2808_s2 + $0x228] sm:$0xff] }
  0x58   :  { %1177 = vmatprep.subr.mxu1 %v234_v21  ;;  %475 = vmatprep.mubr.f32.mxu0 %v70_v22  ;;  %v732_v22 = vld [vmem:[%s2808_s2 + $0x110] sm:$0xff]  ;;  %746 = vst.msk [vmem:[%s2809_s17 + $0x100] sm:$0xff] %vm661_vm0, %v730_v20  ;;  %v801_v59 = vld [vmem:[%s2808_s2 + $0x238] sm:$0xff]  ;;  %812 = vst.msk [vmem:[%s2809_s17 + $0x210] sm:$0xff] %vm661_vm0, %v796_v54 }
  0x59   :  { %1141 = vmatpush3.msra.mxu0 %v234_v21  ;;  %1193 = vmatpush3.msra.mxu1 %v234_v21  ;;  %v731_v21 = vld [vmem:[%s2808_s2 + $0x108] sm:$0xff]  ;;  %748 = vst.msk [vmem:[%s2809_s17 + $0x110] sm:$0xff] %vm661_vm0, %v732_v22  ;;  %v800_v58 = vld [vmem:[%s2808_s2 + $0x230] sm:$0xff]  ;;  %813 = vst.msk [vmem:[%s2809_s17 + $0x218] sm:$0xff] %vm661_vm0, %v797_v55 }
  0x5a   :  { %476 = vmatmul.mubr.f32.gmra.mxu0 %v69_v23  ;;  %1142 = vmatprep.subr.mxu0 %v233_v24  ;;  %v733_v23 = vld [vmem:[%s2808_s2 + $0x118] sm:$0xff]  ;;  %747 = vst.msk [vmem:[%s2809_s17 + $0x108] sm:$0xff] %vm661_vm0, %v731_v21  ;;  %814 = vst.msk [vmem:[%s2809_s17 + $0x220] sm:$0xff] %vm661_vm0, %v798_v56  ;;  %v802_v60 = vld [vmem:[%s2808_s2 + $0x240] sm:$0xff] }
  0x5b   :  { %1178 = vmatprep.subr.mxu1 %v233_v24  ;;  %560 = vmatprep.mubr.f32.mxu1 %v72_v25  ;;  %v735_v25 = vld [vmem:[%s2808_s2 + $0x128] sm:$0xff]  ;;  %749 = vst.msk [vmem:[%s2809_s17 + $0x118] sm:$0xff] %vm661_vm0, %v733_v23  ;;  %v804_v62 = vld [vmem:[%s2808_s2 + $0x250] sm:$0xff]  ;;  %815 = vst.msk [vmem:[%s2809_s17 + $0x228] sm:$0xff] %vm661_vm0, %v799_v57 }
  0x5c   :  { %1143 = vmatpush3.msra.mxu0 %v233_v24  ;;  %1194 = vmatpush3.msra.mxu1 %v233_v24  ;;  %v734_v24 = vld [vmem:[%s2808_s2 + $0x120] sm:$0xff]  ;;  %751 = vst.msk [vmem:[%s2809_s17 + $0x128] sm:$0xff] %vm661_vm0, %v735_v25  ;;  %v803_v61 = vld [vmem:[%s2808_s2 + $0x248] sm:$0xff]  ;;  %816 = vst.msk [vmem:[%s2809_s17 + $0x230] sm:$0xff] %vm661_vm0, %v800_v58 }
  0x5d   :  { %1144 = vmatprep.subr.mxu0 %v232_v26  ;;  %561 = vmatmul.mubr.f32.gmra.mxu1 %v71_v27  ;;  %v737_v27 = vld [vmem:[%s2808_s2 + $0x138] sm:$0xff]  ;;  %750 = vst.msk [vmem:[%s2809_s17 + $0x120] sm:$0xff] %vm661_vm0, %v734_v24  ;;  %817 = vst.msk [vmem:[%s2809_s17 + $0x238] sm:$0xff] %vm661_vm0, %v801_v59  ;;  %v806_v0 = vld [vmem:[%s2808_s2 + $0x260] sm:$0xff] }
  0x5e   :  { %1179 = vmatprep.subr.mxu1 %v232_v26  ;;  %480 = vmatprep.mubr.f32.mxu0 %v79_v28  ;;  %v738_v28 = vld [vmem:[%s2808_s2 + $0x140] sm:$0xff]  ;;  %753 = vst.msk [vmem:[%s2809_s17 + $0x138] sm:$0xff] %vm661_vm0, %v737_v27  ;;  %v805_v63 = vld [vmem:[%s2808_s2 + $0x258] sm:$0xff]  ;;  %v807_v1 = vld [vmem:[%s2808_s2 + $0x268] sm:$0xff] }
  0x5f   :  { %1145 = vmatpush3.msra.mxu0 %v232_v26  ;;  %1195 = vmatpush3.msra.mxu1 %v232_v26  ;;  %v736_v26 = vld [vmem:[%s2808_s2 + $0x130] sm:$0xff]  ;;  %754 = vst.msk [vmem:[%s2809_s17 + $0x140] sm:$0xff] %vm661_vm0, %v738_v28  ;;  %818 = vst.msk [vmem:[%s2809_s17 + $0x240] sm:$0xff] %vm661_vm0, %v802_v60  ;;  %v809_v3 = vld [vmem:[%s2808_s2 + $0x278] sm:$0xff] }
  0x60   :  { %481 = vmatmul.mubr.f32.gmra.mxu0 %v78_v29  ;;  %1146 = vmatprep.subr.mxu0 %v231_v30  ;;  %v739_v29 = vld [vmem:[%s2808_s2 + $0x148] sm:$0xff]  ;;  %752 = vst.msk [vmem:[%s2809_s17 + $0x130] sm:$0xff] %vm661_vm0, %v736_v26  ;;  %819 = vst.msk [vmem:[%s2809_s17 + $0x248] sm:$0xff] %vm661_vm0, %v803_v61  ;;  %v808_v2 = vld [vmem:[%s2808_s2 + $0x270] sm:$0xff] }
  0x61   :  { %1180 = vmatprep.subr.mxu1 %v231_v30  ;;  %565 = vmatprep.mubr.f32.mxu1 %v81_v31  ;;  %v741_v31 = vld [vmem:[%s2808_s2 + $0x158] sm:$0xff]  ;;  %755 = vst.msk [vmem:[%s2809_s17 + $0x148] sm:$0xff] %vm661_vm0, %v739_v29  ;;  %820 = vst.msk [vmem:[%s2809_s17 + $0x250] sm:$0xff] %vm661_vm0, %v804_v62  ;;  %v826_v4 = vld [vmem:[%s2810_s3] sm:$0xff] }
  0x62   :  { %1147 = vmatpush3.msra.mxu0 %v231_v30  ;;  %1196 = vmatpush3.msra.mxu1 %v231_v30  ;;  %v740_v30 = vld [vmem:[%s2808_s2 + $0x150] sm:$0xff]  ;;  %757 = vst.msk [vmem:[%s2809_s17 + $0x158] sm:$0xff] %vm661_vm0, %v741_v31  ;;  %821 = vst.msk [vmem:[%s2809_s17 + $0x258] sm:$0xff] %vm661_vm0, %v805_v63  ;;  %v827_v5 = vld [vmem:[%s2810_s3 + $0x8] sm:$0xff] }
  0x63   :  { %1148 = vmatprep.subr.mxu0 %v230_v32  ;;  %566 = vmatmul.mubr.f32.gmra.mxu1 %v80_v33  ;;  %v743_v33 = vld [vmem:[%s2808_s2 + $0x168] sm:$0xff]  ;;  %756 = vst.msk [vmem:[%s2809_s17 + $0x150] sm:$0xff] %vm661_vm0, %v740_v30  ;;  %822 = vst.msk [vmem:[%s2809_s17 + $0x260] sm:$0xff] %vm661_vm0, %v806_v0  ;;  %v828_v6 = vld [vmem:[%s2810_s3 + $0x10] sm:$0xff] }
  0x64   :  { %1181 = vmatprep.subr.mxu1 %v230_v32  ;;  %485 = vmatprep.mubr.f32.mxu0 %v88_v34  ;;  %v744_v34 = vld [vmem:[%s2808_s2 + $0x170] sm:$0xff]  ;;  %759 = vst.msk [vmem:[%s2809_s17 + $0x168] sm:$0xff] %vm661_vm0, %v743_v33  ;;  %823 = vst.msk [vmem:[%s2809_s17 + $0x268] sm:$0xff] %vm661_vm0, %v807_v1  ;;  %v829_v7 = vld [vmem:[%s2810_s3 + $0x18] sm:$0xff] }
  0x65   :  { %1149 = vmatpush3.msra.mxu0 %v230_v32  ;;  %1197 = vmatpush3.msra.mxu1 %v230_v32  ;;  %v742_v32 = vld [vmem:[%s2808_s2 + $0x160] sm:$0xff]  ;;  %760 = vst.msk [vmem:[%s2809_s17 + $0x170] sm:$0xff] %vm661_vm0, %v744_v34  ;;  %824 = vst.msk [vmem:[%s2809_s17 + $0x270] sm:$0xff] %vm661_vm0, %v808_v2  ;;  %v835_v9 = vld [vmem:[%s2811_s4 + $0x8] sm:$0xff] }
  0x66   :  { %486 = vmatmul.mubr.f32.gmra.mxu0 %v87_v35  ;;  %1150 = vmatprep.subr.mxu0 %v229_v36  ;;  %v745_v35 = vld [vmem:[%s2808_s2 + $0x178] sm:$0xff]  ;;  %758 = vst.msk [vmem:[%s2809_s17 + $0x160] sm:$0xff] %vm661_vm0, %v742_v32  ;;  %825 = vst.msk [vmem:[%s2809_s17 + $0x278] sm:$0xff] %vm661_vm0, %v809_v3  ;;  %v834_v8 = vld [vmem:[%s2811_s4] sm:$0xff] }
  0x67   :  { %1182 = vmatprep.subr.mxu1 %v229_v36  ;;  %570 = vmatprep.mubr.f32.mxu1 %v90_v37  ;;  %761 = vst.msk [vmem:[%s2809_s17 + $0x178] sm:$0xff] %vm661_vm0, %v745_v35  ;;  %v763_v37 = vld [vmem:[%s2808_s2 + $0x188] sm:$0xff]  ;;  %830 = vst.msk [vmem:[%s2809_s17 + $0x280] sm:$0xff] %vm661_vm0, %v826_v4  ;;  %v836_v10 = vld [vmem:[%s2811_s4 + $0x10] sm:$0xff] }
  0x68   :  { %1151 = vmatpush3.msra.mxu0 %v229_v36  ;;  %1198 = vmatpush3.msra.mxu1 %v229_v36  ;;  %v762_v36 = vld [vmem:[%s2808_s2 + $0x180] sm:$0xff]  ;;  %779 = vst.msk [vmem:[%s2809_s17 + $0x188] sm:$0xff] %vm661_vm0, %v763_v37  ;;  %831 = vst.msk [vmem:[%s2809_s17 + $0x288] sm:$0xff] %vm661_vm0, %v827_v5  ;;  %v837_v11 = vld [vmem:[%s2811_s4 + $0x18] sm:$0xff] }
  0x69   :  { %1152 = vmatprep.subr.mxu0 %v228_v38  ;;  %571 = vmatmul.mubr.f32.gmra.mxu1 %v89_v39  ;;  %v765_v39 = vld [vmem:[%s2808_s2 + $0x198] sm:$0xff]  ;;  %778 = vst.msk [vmem:[%s2809_s17 + $0x180] sm:$0xff] %vm661_vm0, %v762_v36  ;;  %832 = vst.msk [vmem:[%s2809_s17 + $0x290] sm:$0xff] %vm661_vm0, %v828_v6  ;;  %v842_v12 = vld [vmem:[%s2812_s5] sm:$0xff] }
  0x6a   :  { %1183 = vmatprep.subr.mxu1 %v228_v38  ;;  %1153 = vmatpush3.msra.mxu0 %v228_v38  ;;  %781 = vst.msk [vmem:[%s2809_s17 + $0x198] sm:$0xff] %vm661_vm0, %v765_v39  ;;  %833 = vst.msk [vmem:[%s2809_s17 + $0x298] sm:$0xff] %vm661_vm0, %v829_v7  ;;  %v843_v13 = vld [vmem:[%s2812_s5 + $0x8] sm:$0xff]  ;;  %v844_v14 = vld [vmem:[%s2812_s5 + $0x10] sm:$0xff] }
  0x6b   :  { %1199 = vmatpush3.msra.mxu1 %v228_v38  ;;  %1154 = vmatprep.subr.mxu0 %v227_v40  ;;  %v764_v38 = vld [vmem:[%s2808_s2 + $0x190] sm:$0xff]  ;;  %838 = vst.msk [vmem:[%s2809_s17 + $0x2a0] sm:$0xff] %vm661_vm0, %v834_v8  ;;  %839 = vst.msk [vmem:[%s2809_s17 + $0x2a8] sm:$0xff] %vm661_vm0, %v835_v9  ;;  %v845_v15 = vld [vmem:[%s2812_s5 + $0x18] sm:$0xff] }
  0x6c   :  { %1184 = vmatprep.subr.mxu1 %v227_v40  ;;  %1155 = vmatpush3.msra.mxu0 %v227_v40  ;;  %780 = vst.msk [vmem:[%s2809_s17 + $0x190] sm:$0xff] %vm661_vm0, %v764_v38  ;;  %840 = vst.msk [vmem:[%s2809_s17 + $0x2b0] sm:$0xff] %vm661_vm0, %v836_v10  ;;  %v850_v16 = vld [vmem:[%s2813_s6] sm:$0xff]  ;;  %v851_v17 = vld [vmem:[%s2813_s6 + $0x8] sm:$0xff] }
  0x6d   :  { %1200 = vmatpush3.msra.mxu1 %v227_v40  ;;  %1156 = vmatprep.subr.mxu0 %v226_v41  ;;  %v766_v40 = vld [vmem:[%s2808_s2 + $0x1a0] sm:$0xff]  ;;  %841 = vst.msk [vmem:[%s2809_s17 + $0x2b8] sm:$0xff] %vm661_vm0, %v837_v11  ;;  %846 = vst.msk [vmem:[%s2809_s17 + $0x2c0] sm:$0xff] %vm661_vm0, %v842_v12  ;;  %v852_v18 = vld [vmem:[%s2813_s6 + $0x10] sm:$0xff] }
  0x6e   :  { %1185 = vmatprep.subr.mxu1 %v226_v41  ;;  %1157 = vmatpush3.msra.mxu0 %v226_v41  ;;  %782 = vst.msk [vmem:[%s2809_s17 + $0x1a0] sm:$0xff] %vm661_vm0, %v766_v40  ;;  %847 = vst.msk [vmem:[%s2809_s17 + $0x2c8] sm:$0xff] %vm661_vm0, %v843_v13  ;;  %v853_v19 = vld [vmem:[%s2813_s6 + $0x18] sm:$0xff]  ;;  %v858_v20 = vld [vmem:[%s2814_s7] sm:$0xff] }
  0x6f   :  { %1201 = vmatpush3.msra.mxu1 %v226_v41  ;;  %1158 = vmatprep.subr.mxu0 %v225_v42  ;;  %v767_v41 = vld [vmem:[%s2808_s2 + $0x1a8] sm:$0xff]  ;;  %848 = vst.msk [vmem:[%s2809_s17 + $0x2d0] sm:$0xff] %vm661_vm0, %v844_v14  ;;  %849 = vst.msk [vmem:[%s2809_s17 + $0x2d8] sm:$0xff] %vm661_vm0, %v845_v15  ;;  %v860_v22 = vld [vmem:[%s2814_s7 + $0x10] sm:$0xff] }
  0x70   :  { %1186 = vmatprep.subr.mxu1 %v225_v42  ;;  %1159 = vmatpush3.msra.mxu0 %v225_v42  ;;  %783 = vst.msk [vmem:[%s2809_s17 + $0x1a8] sm:$0xff] %vm661_vm0, %v767_v41  ;;  %854 = vst.msk [vmem:[%s2809_s17 + $0x2e0] sm:$0xff] %vm661_vm0, %v850_v16  ;;  %v859_v21 = vld [vmem:[%s2814_s7 + $0x8] sm:$0xff]  ;;  %v861_v23 = vld [vmem:[%s2814_s7 + $0x18] sm:$0xff] }
  0x71   :  { %1202 = vmatpush3.msra.mxu1 %v225_v42  ;;  %1160 = vmatprep.subr.mxu0 %v224_v43  ;;  %v768_v42 = vld [vmem:[%s2808_s2 + $0x1b0] sm:$0xff]  ;;  %855 = vst.msk [vmem:[%s2809_s17 + $0x2e8] sm:$0xff] %vm661_vm0, %v851_v17  ;;  %856 = vst.msk [vmem:[%s2809_s17 + $0x2f0] sm:$0xff] %vm661_vm0, %v852_v18  ;;  %v866_v24 = vld [vmem:[%s2815_s8] sm:$0xff] }
  0x72   :  { %1187 = vmatprep.subr.mxu1 %v224_v43  ;;  %1161 = vmatpush3.msra.mxu0 %v224_v43  ;;  %784 = vst.msk [vmem:[%s2809_s17 + $0x1b0] sm:$0xff] %vm661_vm0, %v768_v42  ;;  %857 = vst.msk [vmem:[%s2809_s17 + $0x2f8] sm:$0xff] %vm661_vm0, %v853_v19  ;;  %v867_v25 = vld [vmem:[%s2815_s8 + $0x8] sm:$0xff]  ;;  %v868_v26 = vld [vmem:[%s2815_s8 + $0x10] sm:$0xff] }
  0x73   :  { %1203 = vmatpush3.msra.mxu1 %v224_v43  ;;  %1162 = vmatprep.subr.mxu0 %v223_v44  ;;  %v769_v43 = vld [vmem:[%s2808_s2 + $0x1b8] sm:$0xff]  ;;  %862 = vst.msk [vmem:[%s2809_s17 + $0x300] sm:$0xff] %vm661_vm0, %v858_v20  ;;  %863 = vst.msk [vmem:[%s2809_s17 + $0x308] sm:$0xff] %vm661_vm0, %v859_v21  ;;  %v874_v28 = vld [vmem:[%s2816_s9] sm:$0xff] }
  0x74   :  { %1188 = vmatprep.subr.mxu1 %v223_v44  ;;  %1163 = vmatpush3.msra.mxu0 %v223_v44  ;;  %785 = vst.msk [vmem:[%s2809_s17 + $0x1b8] sm:$0xff] %vm661_vm0, %v769_v43  ;;  %864 = vst.msk [vmem:[%s2809_s17 + $0x310] sm:$0xff] %vm661_vm0, %v860_v22  ;;  %v869_v27 = vld [vmem:[%s2815_s8 + $0x18] sm:$0xff]  ;;  %v875_v29 = vld [vmem:[%s2816_s9 + $0x8] sm:$0xff] }
  0x75   :  { %1204 = vmatpush3.msra.mxu1 %v223_v44  ;;  %1164 = vmatprep.subr.mxu0 %v222_v45  ;;  %v770_v44 = vld [vmem:[%s2808_s2 + $0x1c0] sm:$0xff]  ;;  %865 = vst.msk [vmem:[%s2809_s17 + $0x318] sm:$0xff] %vm661_vm0, %v861_v23  ;;  %870 = vst.msk [vmem:[%s2809_s17 + $0x320] sm:$0xff] %vm661_vm0, %v866_v24  ;;  %v876_v30 = vld [vmem:[%s2816_s9 + $0x10] sm:$0xff] }
  0x76   :  { %1189 = vmatprep.subr.mxu1 %v222_v45  ;;  %1165 = vmatpush3.msra.mxu0 %v222_v45  ;;  %786 = vst.msk [vmem:[%s2809_s17 + $0x1c0] sm:$0xff] %vm661_vm0, %v770_v44  ;;  %871 = vst.msk [vmem:[%s2809_s17 + $0x328] sm:$0xff] %vm661_vm0, %v867_v25  ;;  %v877_v31 = vld [vmem:[%s2816_s9 + $0x18] sm:$0xff]  ;;  %v882_v32 = vld [vmem:[%s2817_s10] sm:$0xff] }
  0x77   :  { %1205 = vmatpush3.msra.mxu1 %v222_v45  ;;  %1166 = vmatprep.subr.mxu0 %v221_v46  ;;  %v771_v45 = vld [vmem:[%s2808_s2 + $0x1c8] sm:$0xff]  ;;  %872 = vst.msk [vmem:[%s2809_s17 + $0x330] sm:$0xff] %vm661_vm0, %v868_v26  ;;  %873 = vst.msk [vmem:[%s2809_s17 + $0x338] sm:$0xff] %vm661_vm0, %v869_v27  ;;  %v884_v34 = vld [vmem:[%s2817_s10 + $0x10] sm:$0xff] }
  0x78   :  { %1190 = vmatprep.subr.mxu1 %v221_v46  ;;  %1167 = vmatpush3.msra.mxu0 %v221_v46  ;;  %787 = vst.msk [vmem:[%s2809_s17 + $0x1c8] sm:$0xff] %vm661_vm0, %v771_v45  ;;  %878 = vst.msk [vmem:[%s2809_s17 + $0x340] sm:$0xff] %vm661_vm0, %v874_v28  ;;  %v883_v33 = vld [vmem:[%s2817_s10 + $0x8] sm:$0xff]  ;;  %v885_v35 = vld [vmem:[%s2817_s10 + $0x18] sm:$0xff] }
  0x79   :  { %1206 = vmatpush3.msra.mxu1 %v221_v46  ;;  %1168 = vmatprep.subr.mxu0 %v220_v47  ;;  %v772_v46 = vld [vmem:[%s2808_s2 + $0x1d0] sm:$0xff]  ;;  %879 = vst.msk [vmem:[%s2809_s17 + $0x348] sm:$0xff] %vm661_vm0, %v875_v29  ;;  %880 = vst.msk [vmem:[%s2809_s17 + $0x350] sm:$0xff] %vm661_vm0, %v876_v30  ;;  %v890_v36 = vld [vmem:[%s2818_s11] sm:$0xff] }
  0x7a   :  { %1191 = vmatprep.subr.mxu1 %v220_v47  ;;  %1169 = vmatpush3.msra.mxu0 %v220_v47  ;;  %788 = vst.msk [vmem:[%s2809_s17 + $0x1d0] sm:$0xff] %vm661_vm0, %v772_v46  ;;  %881 = vst.msk [vmem:[%s2809_s17 + $0x358] sm:$0xff] %vm661_vm0, %v877_v31  ;;  %v891_v37 = vld [vmem:[%s2818_s11 + $0x8] sm:$0xff]  ;;  %v892_v38 = vld [vmem:[%s2818_s11 + $0x10] sm:$0xff] }
  0x7b   :  { %1207 = vmatpush3.msra.mxu1 %v220_v47  ;;  %1170 = vmatprep.mubr.f32.mxu0 %v64_v48  ;;  %v773_v47 = vld [vmem:[%s2808_s2 + $0x1d8] sm:$0xff]  ;;  %v774_v48 = vld [vmem:[%s2808_s2 + $0x1e0] sm:$0xff]  ;;  %886 = vst.msk [vmem:[%s2809_s17 + $0x360] sm:$0xff] %vm661_vm0, %v882_v32  ;;  %887 = vst.msk [vmem:[%s2809_s17 + $0x368] sm:$0xff] %vm661_vm0, %v883_v33 }
  0x7c   :  { %1173 = vmatprep.mubr.f32.mxu1 %v82_v49  ;;  %1171 = vmatmul.mubr.f32.vlgmr.msra.gmra.mxu0 %v73_v50  ;;  %v775_v49 = vld [vmem:[%s2808_s2 + $0x1e8] sm:$0xff]  ;;  %v776_v50 = vld [vmem:[%s2808_s2 + $0x1f0] sm:$0xff]  ;;  %789 = vst.msk [vmem:[%s2809_s17 + $0x1d8] sm:$0xff] %vm661_vm0, %v773_v47  ;;  %790 = vst.msk [vmem:[%s2809_s17 + $0x1e0] sm:$0xff] %vm661_vm0, %v774_v48 }
  0x7d   :  { %1174 = vmatmul.mubr.f32.vlgmr.msra.gmra.mxu1 %v91_v51  ;;  %v777_v51 = vld [vmem:[%s2808_s2 + $0x1f8] sm:$0xff]  ;;  %791 = vst.msk [vmem:[%s2809_s17 + $0x1e8] sm:$0xff] %vm661_vm0, %v775_v49  ;;  %792 = vst.msk [vmem:[%s2809_s17 + $0x1f0] sm:$0xff] %vm661_vm0, %v776_v50  ;;  %v898_v40 = vld [vmem:[%s2819_s12] sm:$0xff] }
  0x7e   :  { %793 = vst.msk [vmem:[%s2809_s17 + $0x1f8] sm:$0xff] %vm661_vm0, %v777_v51  ;;  %888 = vst.msk [vmem:[%s2809_s17 + $0x370] sm:$0xff] %vm661_vm0, %v884_v34  ;;  %v893_v39 = vld [vmem:[%s2818_s11 + $0x18] sm:$0xff]  ;;  %v899_v41 = vld [vmem:[%s2819_s12 + $0x8] sm:$0xff] }
  0x7f   :  { %889 = vst.msk [vmem:[%s2809_s17 + $0x378] sm:$0xff] %vm661_vm0, %v885_v35  ;;  %894 = vst.msk [vmem:[%s2809_s17 + $0x380] sm:$0xff] %vm661_vm0, %v890_v36  ;;  %v900_v42 = vld [vmem:[%s2819_s12 + $0x10] sm:$0xff]  ;;  %v901_v43 = vld [vmem:[%s2819_s12 + $0x18] sm:$0xff] }
  0x80   :  { %895 = vst.msk [vmem:[%s2809_s17 + $0x388] sm:$0xff] %vm661_vm0, %v891_v37  ;;  %896 = vst.msk [vmem:[%s2809_s17 + $0x390] sm:$0xff] %vm661_vm0, %v892_v38  ;;  %v906_v44 = vld [vmem:[%s2820_s13] sm:$0xff]  ;;  %v907_v45 = vld [vmem:[%s2820_s13 + $0x8] sm:$0xff] }
  0x81   :  { %897 = vst.msk [vmem:[%s2809_s17 + $0x398] sm:$0xff] %vm661_vm0, %v893_v39  ;;  %902 = vst.msk [vmem:[%s2809_s17 + $0x3a0] sm:$0xff] %vm661_vm0, %v898_v40  ;;  %v908_v46 = vld [vmem:[%s2820_s13 + $0x10] sm:$0xff]  ;;  %v909_v47 = vld [vmem:[%s2820_s13 + $0x18] sm:$0xff] }
  0x82   :  { %903 = vst.msk [vmem:[%s2809_s17 + $0x3a8] sm:$0xff] %vm661_vm0, %v899_v41  ;;  %904 = vst.msk [vmem:[%s2809_s17 + $0x3b0] sm:$0xff] %vm661_vm0, %v900_v42  ;;  %v914_v48 = vld [vmem:[%s2821_s14] sm:$0xff]  ;;  %v915_v49 = vld [vmem:[%s2821_s14 + $0x8] sm:$0xff] }
  0x83   :  { %905 = vst.msk [vmem:[%s2809_s17 + $0x3b8] sm:$0xff] %vm661_vm0, %v901_v43  ;;  %910 = vst.msk [vmem:[%s2809_s17 + $0x3c0] sm:$0xff] %vm661_vm0, %v906_v44  ;;  %v916_v50 = vld [vmem:[%s2821_s14 + $0x10] sm:$0xff]  ;;  %v917_v51 = vld [vmem:[%s2821_s14 + $0x18] sm:$0xff] }
  0x84   :  { %911 = vst.msk [vmem:[%s2809_s17 + $0x3c8] sm:$0xff] %vm661_vm0, %v907_v45  ;;  %912 = vst.msk [vmem:[%s2809_s17 + $0x3d0] sm:$0xff] %vm661_vm0, %v908_v46  ;;  %v922_v52 = vld [vmem:[%s2822_s15] sm:$0xff]  ;;  %v923_v53 = vld [vmem:[%s2822_s15 + $0x8] sm:$0xff] }
  0x85   :  { %913 = vst.msk [vmem:[%s2809_s17 + $0x3d8] sm:$0xff] %vm661_vm0, %v909_v47  ;;  %918 = vst.msk [vmem:[%s2809_s17 + $0x3e0] sm:$0xff] %vm661_vm0, %v914_v48  ;;  %v924_v54 = vld [vmem:[%s2822_s15 + $0x10] sm:$0xff]  ;;  %v925_v55 = vld [vmem:[%s2822_s15 + $0x18] sm:$0xff] }
  0x86   :  { %919 = vst.msk [vmem:[%s2809_s17 + $0x3e8] sm:$0xff] %vm661_vm0, %v915_v49  ;;  %920 = vst.msk [vmem:[%s2809_s17 + $0x3f0] sm:$0xff] %vm661_vm0, %v916_v50  ;;  %v930_v56 = vld [vmem:[%s2823_s16] sm:$0xff]  ;;  %v931_v57 = vld [vmem:[%s2823_s16 + $0x8] sm:$0xff] }
  0x87   :  { %921 = vst.msk [vmem:[%s2809_s17 + $0x3f8] sm:$0xff] %vm661_vm0, %v917_v51  ;;  %926 = vst.msk [vmem:[%s2809_s17 + $0x400] sm:$0xff] %vm661_vm0, %v922_v52  ;;  %v932_v58 = vld [vmem:[%s2823_s16 + $0x10] sm:$0xff]  ;;  %v933_v59 = vld [vmem:[%s2823_s16 + $0x18] sm:$0xff] }
  0x88   :  { %927 = vst.msk [vmem:[%s2809_s17 + $0x408] sm:$0xff] %vm661_vm0, %v923_v53  ;;  %928 = vst.msk [vmem:[%s2809_s17 + $0x410] sm:$0xff] %vm661_vm0, %v924_v54 }
  0x89   :  { %929 = vst.msk [vmem:[%s2809_s17 + $0x418] sm:$0xff] %vm661_vm0, %v925_v55  ;;  %934 = vst.msk [vmem:[%s2809_s17 + $0x440] sm:$0xff] %vm661_vm0, %v930_v56 }
  0x8a   :  { %935 = vst.msk [vmem:[%s2809_s17 + $0x448] sm:$0xff] %vm661_vm0, %v931_v57  ;;  %936 = vst.msk [vmem:[%s2809_s17 + $0x450] sm:$0xff] %vm661_vm0, %v932_v58 }
  0x8b   :  { %937 = vst.msk [vmem:[%s2809_s17 + $0x458] sm:$0xff] %vm661_vm0, %v933_v59 }
  0xec   :  { %v974_v60 = vpop.f32.mrf.mxu0 }
  0xed   :  { %v1018_v61 = vpop.f32.mrf.mxu1 }
  0xee   :  { %v975_v62 = vpop.f32.mrf.mxu0 }
  0xef   :  { %v1019_v63 = vpop.f32.mrf.mxu1  ;;  %v976_v31 = vadd.f32 %v975_v62, %v974_v60 }
  0xf0   :  { %v1020_v32 = vadd.f32 %v1019_v63, %v1018_v61 }
  0xf2   :  { %v388_v42 = vadd.f32 %v1020_v32, %v976_v31 }
 0x101   :  { %v977_v0 = vpop.f32.mrf.mxu0 }
 0x102   :  { %v1021_v1 = vpop.f32.mrf.mxu1 }
 0x103   :  { %v978_v2 = vpop.f32.mrf.mxu0 }
 0x104   :  { %v1022_v3 = vpop.f32.mrf.mxu1  ;;  %v979_v27 = vadd.f32 %v978_v2, %v977_v0 }
 0x105   :  { %v1023_v28 = vadd.f32 %v1022_v3, %v1021_v1 }
 0x107   :  { %v980_v4 = vpop.f32.mrf.mxu0  ;;  %v393_v38 = vadd.f32 %v1023_v28, %v979_v27 }
 0x108   :  { %v1024_v6 = vpop.f32.mrf.mxu1 }
 0x109   :  { %v981_v5 = vpop.f32.mrf.mxu0 }
 0x10a   :  { %v1025_v8 = vpop.f32.mrf.mxu1  ;;  %v982_v33 = vadd.f32 %v981_v5, %v980_v4 }
 0x10b   :  { %v1026_v34 = vadd.f32 %v1025_v8, %v1024_v6 }
 0x10d   :  { %v983_v7 = vpop.f32.mrf.mxu0  ;;  %v398_v43 = vadd.f32 %v1026_v34, %v982_v33 }
 0x10e   :  { %v1027_v10 = vpop.f32.mrf.mxu1 }
 0x10f   :  { %v984_v9 = vpop.f32.mrf.mxu0 }
 0x110   :  { %v1028_v12 = vpop.f32.mrf.mxu1  ;;  %v985_v29 = vadd.f32 %v984_v9, %v983_v7 }
 0x111   :  { %v1029_v30 = vadd.f32 %v1028_v12, %v1027_v10 }
 0x113   :  { %v403_v39 = vadd.f32 %v1029_v30, %v985_v29 }
 0x114   :  { %v1062_v11 = vpop.f32.mrf.mxu0 }
 0x115   :  { %v1106_v14 = vpop.f32.mrf.mxu1 }
 0x116   :  { %v1063_v13 = vpop.f32.mrf.mxu0 }
 0x117   :  { %v1107_v16 = vpop.f32.mrf.mxu1  ;;  %v1064_v40 = vadd.f32 %v1063_v13, %v1062_v11 }
 0x118   :  { %v1108_v51 = vadd.f32 %v1107_v16, %v1106_v14 }
 0x119   :  { %v473_v48 = vadd.f32 %v1064_v40, %v388_v42 }
 0x11a   :  { %v1065_v15 = vpop.f32.mrf.mxu0 }
 0x11b   :  { %v558_v58 = vadd.f32 %v1108_v51, %v473_v48 }
 0x11c   :  { %v1066_v17 = vpop.f32.mrf.mxu0 }
 0x11d   :  { %v1109_v18 = vpop.f32.mrf.mxu1  ;;  %v1067_v35 = vadd.f32 %v1066_v17, %v1065_v15 }
 0x11f   :  { %v1110_v20 = vpop.f32.mrf.mxu1  ;;  %v478_v44 = vadd.f32 %v1067_v35, %v393_v38 }
 0x120   :  { %v1068_v19 = vpop.f32.mrf.mxu0  ;;  %v1111_v45 = vadd.f32 %v1110_v20, %v1109_v18 }
 0x122   :  { %v1069_v21 = vpop.f32.mrf.mxu0  ;;  %v563_v52 = vadd.f32 %v1111_v45, %v478_v44 }
 0x123   :  { %v1112_v22 = vpop.f32.mrf.mxu1  ;;  %v1070_v41 = vadd.f32 %v1069_v21, %v1068_v19 }
 0x125   :  { %v1113_v24 = vpop.f32.mrf.mxu1  ;;  %v483_v49 = vadd.f32 %v1070_v41, %v398_v43 }
 0x126   :  { %v1071_v23 = vpop.f32.mrf.mxu0  ;;  %v1114_v50 = vadd.f32 %v1113_v24, %v1112_v22 }
 0x128   :  { %v1072_v25 = vpop.f32.mrf.mxu0  ;;  %v568_v59 = vadd.f32 %v1114_v50, %v483_v49 }
 0x129   :  { %v1115_v26 = vpop.f32.mrf.mxu1  ;;  %v1073_v36 = vadd.f32 %v1072_v25, %v1071_v23 }
 0x12b   :  { %v1116_v37 = vpop.f32.mrf.mxu1  ;;  %v488_v46 = vadd.f32 %v1073_v36, %v403_v39 }
 0x12c   :  { %v1117_v47 = vadd.f32 %v1116_v37, %v1115_v26 }
 0x12e   :  { %v573_v53 = vadd.f32 %v1117_v47, %v488_v46 }
 0x13c   :  { %v1172_v54 = vpop.f32.mrf.mxu0 }
 0x13d   :  { %v1175_v55 = vpop.f32.mrf.mxu1  ;;  %v648_v56 = vadd.f32 %v1172_v54, %v563_v52 }
 0x13e   :  { %v658_v57 = vadd.f32 %v1175_v55, %v573_v53  ;;  %v642_v60 = vpop.f32.mrf.mxu0 }
 0x13f   :  { %v652_v61 = vpop.f32.mrf.mxu1  ;;  %663 = vst.msk [vmem:[%s2809_s17 + $0x428] sm:$0xff] %vm661_vm0, %v648_v56  ;;  %v643_v62 = vadd.f32 %v642_v60, %v558_v58 }
 0x140   :  { %665 = vst.msk [vmem:[%s2809_s17 + $0x438] sm:$0xff] %vm661_vm0, %v658_v57  ;;  %v653_v63 = vadd.f32 %v652_v61, %v568_v59 }
 0x141   :  { %662 = vst.msk [vmem:[%s2809_s17 + $0x420] sm:$0xff] %vm661_vm0, %v643_v62 }
 0x142   :  { %664 = vst.msk [vmem:[%s2809_s17 + $0x430] sm:$0xff] %vm661_vm0, %v653_v63 }

</bundles_post_ra>
